<compile_context>
chip_gen: v5e
topology: v5e:2x2
jax: 0.10.0
libtpu: 0.0.40
codegen_flags: <defaults>
</compile_context>

<pallas_src>
import functools

import jax
import jax.numpy as jnp
from jax.experimental import pallas as pl
from jax.experimental.pallas import tpu as pltpu


# ---------------------------------------------------------------------------
# Kernels
# ---------------------------------------------------------------------------

def _dspn_single_kernel(x_ref, m_ref, w1x_ref, w1m_ref, b1_ref, w2_ref, out_ref):
    """Fast path: one grid step per batch row covers the whole N extent."""
    # x_ref: (1, C, N)  m_ref: (1, 1, N)
    # w1x_ref: (D, C)   w1m_ref/b1_ref: (D, 1)   w2_ref: (D, D)
    # out_ref: (1, 1, D)
    x = x_ref[0]                                  # (C, N)  -- N on lanes
    m = m_ref[0]                                  # (1, N)

    # Layer 1: x-channel contraction on the MXU; mask channel + bias on VPU.
    h = jnp.dot(w1x_ref[...], x, preferred_element_type=jnp.float32)   # (D, N)
    h = jnp.maximum(h + w1m_ref[...] * m + b1_ref[...], 0.0)

    # Layer 2 on the MXU (b2 hoisted to the wrapper; max is shift-invariant).
    y = jnp.dot(w2_ref[...], h, preferred_element_type=jnp.float32)    # (D, N)

    out_ref[...] = jnp.max(y, axis=1)[None, None, :]


def _dspn_tiled_kernel(x_ref, m_ref, w1x_ref, w1m_ref, b1_ref, w2_ref,
                       out_ref, acc_ref, *, n_valid, n_padded):
    """Tiled path for large N: grid (B, NT); elementwise running max into a
    (D, TN) VMEM scratch; single cross-lane reduce + store per batch row."""
    n_idx = pl.program_id(1)
    tn = x_ref.shape[-1]

    @pl.when(n_idx == 0)
    def _init():
        acc_ref[...] = jnp.full(acc_ref.shape, -jnp.inf, dtype=jnp.float32)

    x = x_ref[0]                                  # (C, TN)
    m = m_ref[0]                                  # (1, TN)

    h = jnp.dot(w1x_ref[...], x, preferred_element_type=jnp.float32)   # (D, TN)
    h = jnp.maximum(h + w1m_ref[...] * m + b1_ref[...], 0.0)
    y = jnp.dot(w2_ref[...], h, preferred_element_type=jnp.float32)    # (D, TN)

    if n_padded != n_valid:
        # Padded columns would otherwise contribute the constant w2@relu(b1)
        # to the max -> push them to -inf (one iota/cmp/select on the VPU).
        col = n_idx * tn + jax.lax.broadcasted_iota(jnp.int32, y.shape, 1)
        y = jnp.where(col < n_valid, y, -jnp.inf)

    # Deferred reduce: VPU-only elementwise max in the steady state
    # (no per-tile XLU reduce, no per-tile sub-128-lane masked store).
    acc_ref[...] = jnp.maximum(acc_ref[...], y)

    @pl.when(n_idx == pl.num_programs(1) - 1)
    def _finalize():
        out_ref[...] = jnp.max(acc_ref[...], axis=1)[None, None, :]


# ---------------------------------------------------------------------------
# Wrapper
# ---------------------------------------------------------------------------

_TILE_CANDIDATES = (16384, 8192, 4096, 2048, 1024, 512, 256, 128)


def _choose_tiling(n, max_single_tile):
    """Returns (TN, NT, N_padded)."""
    if n <= max_single_tile:
        # Full-width block: legal even when n is not a 128-multiple because the
        # block's last two dims equal the full array dims. No padding needed.
        return n, 1, n
    # Tiled path: TN must be a multiple of 128; accept <= 12.5% padding waste.
    for t in _TILE_CANDIDATES:
        if t > max_single_tile:
            continue
        n_pad = pl.cdiv(n, t) * t
        if (n_pad - n) * 8 <= n:
            return t, n_pad // t, n_pad
    n_pad = pl.cdiv(n, 128) * 128
    return 128, n_pad // 128, n_pad


def max_encoder_dspn(x, mask, w1, b1, w2, b2, *, max_single_tile=16384):
    """Forward pass of MaxEncoderDSPN.

    x: (B, C, N) f32, mask: (B, N) f32.
    w1: (D, C+1, 1), b1: (D,), w2: (D, D, 1), b2: (D,)  (torch Conv1d, k=1).
    Returns (B, D).
    """
    B, C, N = x.shape
    D = w1.shape[0]
    TN, NT, N_pad = _choose_tiling(N, max_single_tile)

    x = x.astype(jnp.float32)
    mask3 = mask.astype(jnp.float32).reshape(B, 1, N)
    if N_pad != N:
        pad = N_pad - N
        x = jnp.pad(x, ((0, 0), (0, 0), (0, pad)))
        mask3 = jnp.pad(mask3, ((0, 0), (0, 0), (0, pad)))

    # Split the fused (C+1)-channel layer-1 weight: x-part feeds the MXU,
    # mask-part stays a single broadcast FMA on the VPU (no wrapper concat).
    w1x = w1[:, :C, 0].astype(jnp.float32)                   # (D, C)
    w1m = w1[:, C, 0].reshape(D, 1).astype(jnp.float32)      # (D, 1)
    b1c = b1.reshape(D, 1).astype(jnp.float32)               # (D, 1)
    w2m = w2[:, :, 0].astype(jnp.float32)                    # (D, D)

    flops = int(2 * B * N_pad * ((C + 1) * D + D * D))
    bytes_accessed = int(4 * (x.size + mask3.size + w1x.size + w1m.size
                              + b1c.size + w2m.size + B * D))
    cost = pl.CostEstimate(flops=flops, transcendentals=0,
                           bytes_accessed=bytes_accessed)

    if NT == 1 and N_pad == N:
        kernel = _dspn_single_kernel
        scratch = []
    else:
        kernel = functools.partial(_dspn_tiled_kernel,
                                   n_valid=N, n_padded=N_pad)
        scratch = [pltpu.VMEM((D, TN), jnp.float32)]

    out3 = pl.pallas_call(
        kernel,
        out_shape=jax.ShapeDtypeStruct((B, 1, D), jnp.float32),
        grid=(B, NT),
        in_specs=[
            pl.BlockSpec((1, C, TN), lambda b, n: (b, 0, n)),   # x tile
            pl.BlockSpec((1, 1, TN), lambda b, n: (b, 0, n)),   # mask tile
            pl.BlockSpec((D, C), lambda b, n: (0, 0)),          # weights stay
            pl.BlockSpec((D, 1), lambda b, n: (0, 0)),          #  resident in
            pl.BlockSpec((D, 1), lambda b, n: (0, 0)),          #  VMEM
            pl.BlockSpec((D, D), lambda b, n: (0, 0)),
        ],
        # Constant block index across the N axis -> single HBM writeback / row.
        out_specs=pl.BlockSpec((1, 1, D), lambda b, n: (b, 0, 0)),
        scratch_shapes=scratch,
        compiler_params=pltpu.CompilerParams(
            dimension_semantics=("parallel", "arbitrary"),
            vmem_limit_bytes=32 * 1024 * 1024,
        ),
        cost_estimate=cost,
    )(x, mask3, w1x, w1m, b1c, w2m)

    # b2 hoisted out of the kernel: max_n(y + b2) == max_n(y) + b2.
    return out3.reshape(B, D) + b2.astype(jnp.float32)[None, :]


# ---------------------------------------------------------------------------
# Pure-JAX reference (mirrors the PyTorch module)
# ---------------------------------------------------------------------------

def _reference(x, mask, w1, b1, w2, b2):
    xm = jnp.concatenate([x, mask[:, None, :]], axis=1)            # (B, C+1, N)
    h = jnp.einsum("dc,bcn->bdn", w1[:, :, 0], xm) + b1[None, :, None]
    h = jnp.maximum(h, 0.0)
    y = jnp.einsum("dc,bcn->bdn", w2[:, :, 0], h) + b2[None, :, None]
    return jnp.max(y, axis=2)                                      # (B, D)


if __name__ == "__main__":
    B, C, N, D = 2, 4, 16, 32

    key = jax.random.PRNGKey(0)
    kx, km, kw1, kb1, kw2, kb2 = jax.random.split(key, 6)

    x = jax.random.normal(kx, (B, C, N), dtype=jnp.float32)
    mask = (jax.random.uniform(km, (B, N)) > 0.3).astype(jnp.float32)

    # Deterministic parameters (torch Conv1d weight shapes, kernel_size=1).
    w1 = 0.1 * jax.random.normal(kw1, (D, C + 1, 1), dtype=jnp.float32)
    b1 = 0.1 * jax.random.normal(kb1, (D,), dtype=jnp.float32)
    w2 = 0.1 * jax.random.normal(kw2, (D, D, 1), dtype=jnp.float32)
    b2 = 0.1 * jax.random.normal(kb2, (D,), dtype=jnp.float32)

    # 1) Fast (single-tile) path — the shapes implied by the module.
    out = jax.block_until_ready(max_encoder_dspn(x, mask, w1, b1, w2, b2))
    ref = _reference(x, mask, w1, b1, w2, b2)
    assert out.shape == (B, D)
    assert jnp.allclose(out, ref, atol=1e-5, rtol=1e-5), "fast-path mismatch"

    # 2) Tiled + padded path (forced via a small single-tile cap) to verify the
    #    accumulator / -inf masking code path also runs clean and correct.
    N2 = 300
    kx2, km2 = jax.random.split(jax.random.PRNGKey(1))
    x2 = jax.random.normal(kx2, (B, C, N2), dtype=jnp.float32)
    mask2 = (jax.random.uniform(km2, (B, N2)) > 0.3).astype(jnp.float32)
    out2 = jax.block_until_ready(
        max_encoder_dspn(x2, mask2, w1, b1, w2, b2, max_single_tile=64))
    ref2 = _reference(x2, mask2, w1, b1, w2, b2)
    assert jnp.allclose(out2, ref2, atol=1e-5, rtol=1e-5), "tiled-path mismatch"

    # TODO(synk): the stateful `self.salidaConv` attribute (caching of the
    # pre-max activations) is not reproduced; only the returned max-pooled
    # features are computed.
    print("KERNEL_OK")
</pallas_src>

<mosaic_0001>
module attributes {stable_mosaic.version = 11 : i64} {
  func.func @_dspn_single_kernel(%arg0: i32, %arg1: i32, %arg2: memref<1x4x16xf32, #tpu.memory_space<vmem>>, %arg3: memref<1x1x16xf32, #tpu.memory_space<vmem>>, %arg4: memref<32x4xf32, #tpu.memory_space<vmem>>, %arg5: memref<32x1xf32, #tpu.memory_space<vmem>>, %arg6: memref<32x1xf32, #tpu.memory_space<vmem>>, %arg7: memref<32x32xf32, #tpu.memory_space<vmem>>, %arg8: memref<1x1x32xf32, #tpu.memory_space<vmem>>) attributes {dimension_semantics = [#tpu.dimension_semantics<parallel>, #tpu.dimension_semantics<arbitrary>], iteration_bounds = array<i64: 2, 1>, scalar_prefetch = 0 : i64, scratch_operands = 0 : i64, tpu.core_type = #tpu.core_type<tc>, window_params = [{transform_indices = @transform_0, window_bounds = array<i64: 1, 4, 16>}, {transform_indices = @transform_1, window_bounds = array<i64: 1, 1, 16>}, {pipeline_mode = #tpu.pipeline_mode<synchronous>, transform_indices = @transform_2, window_bounds = array<i64: 32, 4>}, {pipeline_mode = #tpu.pipeline_mode<synchronous>, transform_indices = @transform_3, window_bounds = array<i64: 32, 1>}, {pipeline_mode = #tpu.pipeline_mode<synchronous>, transform_indices = @transform_4, window_bounds = array<i64: 32, 1>}, {pipeline_mode = #tpu.pipeline_mode<synchronous>, transform_indices = @transform_5, window_bounds = array<i64: 32, 32>}, {transform_indices = @transform_6, window_bounds = array<i64: 1, 1, 32>}]} {
    %c0 = arith.constant 0 : index
    %c0_0 = arith.constant 0 : index
    %c0_1 = arith.constant 0 : index
    %0 = vector.load %arg2[%c0, %c0_0, %c0_1] : memref<1x4x16xf32, #tpu.memory_space<vmem>>, vector<1x4x16xf32>
    %1 = vector.shape_cast %0 : vector<1x4x16xf32> to vector<4x16xf32>
    %c0_2 = arith.constant 0 : index
    %c0_3 = arith.constant 0 : index
    %c0_4 = arith.constant 0 : index
    %2 = vector.load %arg3[%c0_2, %c0_3, %c0_4] : memref<1x1x16xf32, #tpu.memory_space<vmem>>, vector<1x1x16xf32>
    %3 = vector.shape_cast %2 : vector<1x1x16xf32> to vector<1x16xf32>
    %c0_5 = arith.constant 0 : index
    %c0_6 = arith.constant 0 : index
    %4 = vector.load %arg4[%c0_5, %c0_6] : memref<32x4xf32, #tpu.memory_space<vmem>>, vector<32x4xf32>
    %cst = arith.constant dense<0.000000e+00> : vector<32x16xf32>
    %5 = tpu.matmul %4, %1, %cst {dimension_numbers = #tpu.dot_dimension_numbers<[1], [0], [0], [1], [0, 0, 1, 1], [], []>} : vector<32x4xf32>, vector<4x16xf32>, vector<32x16xf32> -> vector<32x16xf32>
    %c0_7 = arith.constant 0 : index
    %c0_8 = arith.constant 0 : index
    %6 = vector.load %arg5[%c0_7, %c0_8] : memref<32x1xf32, #tpu.memory_space<vmem>>, vector<32x1xf32>
    %7 = vector.broadcast %6 : vector<32x1xf32> to vector<32x16xf32>
    %8 = vector.broadcast %3 : vector<1x16xf32> to vector<32x16xf32>
    %9 = arith.mulf %7, %8 : vector<32x16xf32>
    %10 = arith.addf %5, %9 : vector<32x16xf32>
    %c0_9 = arith.constant 0 : index
    %c0_10 = arith.constant 0 : index
    %11 = vector.load %arg6[%c0_9, %c0_10] : memref<32x1xf32, #tpu.memory_space<vmem>>, vector<32x1xf32>
    %12 = vector.broadcast %11 : vector<32x1xf32> to vector<32x16xf32>
    %13 = arith.addf %10, %12 : vector<32x16xf32>
    %cst_11 = arith.constant 0.000000e+00 : f32
    %14 = vector.broadcast %cst_11 : f32 to vector<32x16xf32>
    %15 = arith.maximumf %13, %14 : vector<32x16xf32>
    %c0_12 = arith.constant 0 : index
    %c0_13 = arith.constant 0 : index
    %16 = vector.load %arg7[%c0_12, %c0_13] : memref<32x32xf32, #tpu.memory_space<vmem>>, vector<32x32xf32>
    %cst_14 = arith.constant dense<0.000000e+00> : vector<32x16xf32>
    %17 = tpu.matmul %16, %15, %cst_14 {dimension_numbers = #tpu.dot_dimension_numbers<[1], [0], [0], [1], [0, 0, 1, 1], [], []>} : vector<32x32xf32>, vector<32x16xf32>, vector<32x16xf32> -> vector<32x16xf32>
    %cst_15 = arith.constant dense<0xFF800000> : vector<32xf32>
    %18 = vector.multi_reduction <maximumf>, %17, %cst_15 [1] : vector<32x16xf32> to vector<32xf32>
    %19 = vector.shape_cast %18 : vector<32xf32> to vector<1x1x32xf32>
    %c0_16 = arith.constant 0 : index
    %c0_17 = arith.constant 0 : index
    %c0_18 = arith.constant 0 : index
    %20 = vector.load %arg8[%c0_16, %c0_17, %c0_18] : memref<1x1x32xf32, #tpu.memory_space<vmem>>, vector<1x1x32xf32>
    tpu.vector_store %arg8[%c0_16, %c0_17, %c0_18], %19 {strides = array<i32>} : memref<1x1x32xf32, #tpu.memory_space<vmem>>, vector<1x1x32xf32>,
    return
  }
  func.func @transform_0(%arg0: i32, %arg1: i32) -> (i32, i32, i32) {
    %c0_i32 = arith.constant 0 : i32
    %c0_i32_0 = arith.constant 0 : i32
    return %arg0, %c0_i32, %arg1 : i32, i32, i32
  }
  func.func @transform_1(%arg0: i32, %arg1: i32) -> (i32, i32, i32) {
    %c0_i32 = arith.constant 0 : i32
    %c0_i32_0 = arith.constant 0 : i32
    return %arg0, %c0_i32, %arg1 : i32, i32, i32
  }
  func.func @transform_2(%arg0: i32, %arg1: i32) -> (i32, i32) {
    %c0_i32 = arith.constant 0 : i32
    %c0_i32_0 = arith.constant 0 : i32
    %c0_i32_1 = arith.constant 0 : i32
    return %c0_i32, %c0_i32_0 : i32, i32
  }
  func.func @transform_3(%arg0: i32, %arg1: i32) -> (i32, i32) {
    %c0_i32 = arith.constant 0 : i32
    %c0_i32_0 = arith.constant 0 : i32
    %c0_i32_1 = arith.constant 0 : i32
    return %c0_i32, %c0_i32_0 : i32, i32
  }
  func.func @transform_4(%arg0: i32, %arg1: i32) -> (i32, i32) {
    %c0_i32 = arith.constant 0 : i32
    %c0_i32_0 = arith.constant 0 : i32
    %c0_i32_1 = arith.constant 0 : i32
    return %c0_i32, %c0_i32_0 : i32, i32
  }
  func.func @transform_5(%arg0: i32, %arg1: i32) -> (i32, i32) {
    %c0_i32 = arith.constant 0 : i32
    %c0_i32_0 = arith.constant 0 : i32
    %c0_i32_1 = arith.constant 0 : i32
    return %c0_i32, %c0_i32_0 : i32, i32
  }
  func.func @transform_6(%arg0: i32, %arg1: i32) -> (i32, i32, i32) {
    %c0_i32 = arith.constant 0 : i32
    %c0_i32_0 = arith.constant 0 : i32
    %c0_i32_1 = arith.constant 0 : i32
    return %arg0, %c0_i32, %c0_i32_0 : i32, i32, i32
  }
}

</mosaic_0001>

<bundles_post_ra>
// kernel: tpu_custom_call.1
= control target key start
LH: loop header
LB: loop body
LE: loop exit
PB: predicated region body
PF: predicated region fallthrough
CT: control target
= control target key end

     0   :  { %11 = vsyncpa [#allocation3], 0  ;;  %s940_s0 = inlined_call_operand.vmem [shape: f32[2,4,16], index: 0, kind: input, shape index: {}]   ;;  %s941_s1 = inlined_call_operand.vmem [shape: f32[2,1,16], index: 1, kind: input, shape index: {}]   ;;  %s942_s2 = inlined_call_operand.vmem [shape: f32[32,4], index: 2, kind: input, shape index: {}]   ;;  %s943_s3 = inlined_call_operand.vmem [shape: f32[32,1], index: 3, kind: input, shape index: {}]   ;;  %s944_s4 = inlined_call_operand.vmem [shape: f32[32,1], index: 4, kind: input, shape index: {}]   ;;  %s945_s5 = inlined_call_operand.vmem [shape: f32[32,32], index: 5, kind: input, shape index: {}]   ;;  %s946_s6 = inlined_call_operand.hbm [shape: f32[2,1,32], index: 6, kind: output, shape index: {}]  }
   0x1   :  { %13 = vsyncpa [#allocation3 + $0x1], 0  ;;  %s779_s21 = smov 0   ;;  %s781_s22 = smov 0  }
   0x2   :  { %s783_s23 = smov 0   ;;  %s785_s24 = smov 0  }
   0x3   :  { %s787_s25 = smov 0   ;;  %s789_s26 = smov 0  }
   0x4 LB: > { %s581_s27 = sadd.s32 4294967295, %s741_s26   ;;  %s582_s28 = sadd.s32 4294967294, %s741_s26   ;;  %s741_s26 = sphi %s789_s26, %s19_s26   ;;  %s737_s25 = sphi %s787_s25, %s953_s25   ;;  %s733_s24 = sphi %s785_s24, %s952_s24   ;;  %s729_s23 = sphi %s783_s23, %s951_s23   ;;  %s725_s22 = sphi %s781_s22, %s950_s22   ;;  %s721_s21 = sphi %s779_s21, %s949_s21  }
   0x5   : > { %s31_s29 = sadd.s32 1, %s737_s25  ;;  %s178_s30 = sadd.s32 1, %s729_s23 }
   0x6   : > { %p33_p0 = scmp.ge.s32.totalorder %s31_s29, 2  ;;  %p188_p1 = scmp.ne.s32.totalorder %s729_s23, %s725_s22 }
   0x7   : > { %p189_p2 = scmp.eq.s32.totalorder %s581_s27, 1  ;;  %p194_p3 = scmp.ne.s32.totalorder %s725_s22, %s721_s21 }
   0x8   : > { %s955_s29 = smov (%p33_p0, %s31_s29), 0  ;;  %p195_p5 = scmp.eq.s32.totalorder %s582_s28, 1 }
   0x9   : > { %p819_p4 = por %p189_p2, %p188_p1  ;;  %s175_s8 = ssub.s32 %s737_s25, %s955_s29 }
   0xa   : > { %p585_p6 = scmp.ge.s32.totalorder %s741_s26, 1  ;;  %p176_p7 = scmp.eq.s32.totalorder %s175_s8, 0 }
   0xb   : > { %p826_p8 = por %p195_p5, %p194_p3  ;;  %p244_p9 = scmp.lt.s32.totalorder %s741_s26, 3 }
   0xc   : > { %s832_s10 = scalar_select %p176_p7, %s729_s23, %s178_s30  }
   0xd   : > { %p245_p10 = pnand %p585_p6, %p244_p9 }
   0xe   : > { %p281_p11 = scmp.lt.s32.totalorder (!%p245_p10), %s733_s24, 1  ;;  %s279_s13 = sand.u32 (!%p245_p10), 1, %s725_s22  }
   0xf   : > { %248 = sbr.rel (%p245_p10) target bundleno = 450 (0x1c2), region = 44  ;;  %s499_s17 = scalar_lea.hbm (!%p245_p10), %s946_s6, %s733_s24 }
  0x10   : > { %s280_s19 = scalar_lea.vmem (!%p245_p10), [#allocation2], %s279_s13 }
  0x11   : > { %s501_s20 = sshll.u32 (!%p245_p10), %s280_s19, 4  ;;  %s502_s20 = int_to_ptr.vmem [resolvable:$true] %s501_s20 }
  0x14   : > { %v303_v0 = vld [vmem:[%s943_s3 + $0x18] sm:$0xff]  ;;  %v743_v1 = vmov 0   ;;  %v301_v2 = vld [vmem:[%s943_s3 + $0x8] sm:$0xff]  ;;  %s842_s15 = scalar_select %p281_p11, %s733_s24, 1  ;;  %v300_v3 = vld [vmem:[%s943_s3] sm:$0xff]  ;;  %vm344_vm0 = vcmask 1043456   ;;  %v472_v55 = vlaneseq }
  0x15   : > { %659 = vset.pattern.permute.xlu0 %v743_v1  ;;  %660 = vset.pattern.permute.xlu1 %v743_v1  ;;  %v297_v4 = vld [vmem:[%s942_s2 + $0x8] sm:$0xff]  ;;  %vm331_vm1 = vcmask 31744   ;;  %v296_v5 = vld [vmem:[%s942_s2] sm:$0xff]  ;;  %v302_v7 = vld [vmem:[%s943_s3 + $0x10] sm:$0xff]  ;;  %vm413_vm2 = vcmask 261120   ;;  %vm455_vm3 = vcmask 130048  }
  0x16   : > { %321 = vperm.xlu0 %659, %v303_v0   ;;  %311 = vperm.xlu1 %660, %v301_v2   ;;  %s586_s18 = sshll.u32 %s842_s15, 2  ;;  %s293_s27 = scalar_lea.vmem %s941_s1, %s842_s15  ;;  %v380_v8 = vld [vmem:[%s944_s4 + $0x18] sm:$0xff]  ;;  %v379_v9 = vld [vmem:[%s944_s4 + $0x10] sm:$0xff]  ;;  %v378_v11 = vld [vmem:[%s944_s4 + $0x8] sm:$0xff]  ;;  %v473_v56 = vand.u32 127, %v472_v55  ;;  %vm477_vm4 = vcmask 130112  }
  0x17   : > { %661 = vset.pattern.permute.xlu2 %v743_v1  ;;  %s287_s8 = scalar_lea.vmem %s940_s0, %s586_s18  ;;  %v298_v10 = vld [vmem:[%s942_s2 + $0x10] sm:$0xff]  ;;  %v377_v12 = vld [vmem:[%s944_s4] sm:$0xff]  ;;  %v299_v13 = vld [vmem:[%s942_s2 + $0x18] sm:$0xff]  ;;  %vm481_vm5 = vcmask 195712   ;;  %s503_s15 = sshll.u32 %s499_s17, 4  ;;  %vm485_vm6 = vcmask 261312   ;;  %s504_s15 = int_to_ptr.hbm [resolvable:$true] %s503_s15 }
  0x18   : > { %306 = vperm.xlu2 %661, %v300_v3   ;;  %v294_v6 = vld [vmem:[%s287_s8] sm:$0xf]  ;;  %v411_v44 = vld [vmem:[%s945_s5 + $0x10] sm:$0xff]  ;;  %v410_v45 = vld [vmem:[%s945_s5 + $0x8] sm:$0xff]  ;;  %v475_v57 = vadd.s32 4294967288, %v473_v56  ;;  %v479_v61 = vadd.s32 4294967280, %v473_v56 }
  0x19   : > { %598 = vmatpush.msk.msra.mxu3 %vm344_vm0, %v294_v6  ;;  %587 = vmatpush.msk.msra.mxu0 %vm344_vm0, %v294_v6  ;;  %v662_v20 = vld [vmem:[%s293_s27] ss:$0 sm:$0xff]  ;;  %v412_v46 = vld [vmem:[%s945_s5 + $0x18] sm:$0xff]  ;;  %v483_v0 = vadd.s32 4294967272, %v473_v56  ;;  %vm488_vm7 = vcmask 253952   ;;  %s491_s24 = scalar_lea.sflag [#allocation3], %s279_s13 }
  0x1a   : > { %589 = vmatmul.msk.f32.vlgmr.msra.gmra.mxu3 %vm331_vm1, %v297_v4  ;;  %588 = vmatmul.msk.f32.vlgmr.msra.gmra.mxu0 %vm331_vm1, %v296_v5  ;;  %v409_v43 = vld [vmem:[%s945_s5] sm:$0xff]  ;;  %s677_s27 = sshra.s32 %s504_s15, 4  ;;  %s683_s8 = scalar_lea.hbm %s946_s6, 2  ;;  %s678_s27 = int_to_ptr.hbm [resolvable:$true] %s677_s27 }
  0x1b   : > { %s679_s18 = scalar_lea.hbm %s678_s27, 1  ;;  %p684_p1 = scmp.lt.s32.totalorder %s678_s27, %s946_s6 }
  0x1c   : > { %p680_p12 = scmp.ne.s32.totalorder %s678_s27, %s679_s18  ;;  %p685_p2 = scmp.lt.s32.totalorder %s683_s8, %s679_s18 }
  0x1e   : > { %316 = vperm.xlu0 %659, %v302_v7   ;;  %398 = vperm.xlu1 %660, %v380_v8   ;;  %p681_p13 = pnand %p680_p12, %p819_p4  ;;  %p686_p3 = por %p685_p2, %p684_p1 }
  0x20   : > { %393 = vperm.xlu2 %661, %v379_v9   ;;  %p682_p0 = pneg %p681_p13 }
  0x22   : > { %590 = vmatmul.msk.f32.gmra.mxu3 %vm331_vm1, %v298_v10  ;;  %p687_p5 = pnand %p686_p3, %p682_p0 }
  0x26   : > { %388 = vperm.xlu0 %659, %v378_v11   ;;  %383 = vperm.xlu1 %660, %v377_v12  }
  0x2a   : > { %591 = vmatmul.msk.f32.gmra.mxu3 %vm331_vm1, %v299_v13 }
  0x72   : > { %v307_v17 = vpop.permute.xlu2 %306 }
  0x73   : > { %v327_v25 = vmul.f32 %v662_v20, %v307_v17 }
  0x7a   : > { %v394_v27 = vpop.permute.xlu2 %393 }
  0x88   : > { %v322_v14 = vpop.permute.xlu0 %321  ;;  %v312_v15 = vpop.permute.xlu1 %311 }
  0x89   : > { %v328_v23 = vmul.f32 %v662_v20, %v312_v15  ;;  %v330_v24 = vmul.f32 %v662_v20, %v322_v14 }
  0x90   : > { %v317_v18 = vpop.permute.xlu0 %316  ;;  %v399_v21 = vpop.permute.xlu1 %398 }
  0x91   : > { %v329_v22 = vmul.f32 %v662_v20, %v317_v18 }
  0x97   : > { %v365_v28 = vpop.f32.mrf.mxu0 }
  0x98   : > { %v389_v32 = vpop.permute.xlu0 %388  ;;  %v366_v33 = vadd.f32 %v365_v28, %v327_v25  ;;  %v384_v36 = vpop.permute.xlu1 %383 }
  0x9a   : > { %v401_v39 = vadd.f32 %v384_v36, %v366_v33 }
  0x9c   : > { %v405_v42 = vmax.f32 %v401_v39, 0.0 }
  0x9d   : > { %v368_v16 = vpop.f32.mrf.mxu3 }
  0x9e   : > { %v369_v30 = vadd.f32 %v368_v16, %v328_v23 }
  0xa0   : > { %v402_v37 = vadd.f32 %v389_v32, %v369_v30 }
  0xa2   : > { %v406_v41 = vmax.f32 %v402_v37, 0.0 }
  0xa5   : > { %v371_v19 = vpop.f32.mrf.mxu3 }
  0xa6   : > { %v372_v26 = vadd.f32 %v371_v19, %v329_v22 }
  0xa8   : > { %v403_v34 = vadd.f32 %v394_v27, %v372_v26 }
  0xaa   : > { %v407_v40 = vmax.f32 %v403_v34, 0.0 }
  0xad   : > { %v374_v29 = vpop.f32.mrf.mxu3 }
  0xae   : > { %v375_v31 = vadd.f32 %v374_v29, %v330_v24 }
  0xb0   : > { %v404_v35 = vadd.f32 %v399_v21, %v375_v31 }
  0xb2   : > { %v408_v38 = vmax.f32 %v404_v35, 0.0 }
  0xb4   : > { %438 = vmatpush.msra.mxu1 %v408_v38  ;;  %599 = vmatpush.msra.mxu2 %v408_v38 }
  0xb6   : > { %439 = vmatpush.msra.mxu1 %v407_v40  ;;  %600 = vmatpush.msra.mxu2 %v407_v40 }
  0xb8   : > { %440 = vmatpush.msra.mxu1 %v406_v41  ;;  %601 = vmatpush.msra.mxu2 %v406_v41 }
  0xba   : > { %441 = vmatpush.msra.mxu1 %v405_v42  ;;  %602 = vmatpush.msra.mxu2 %v405_v42 }
  0xbb   : > { %592 = vmatmul.msk.f32.vlgmr.msra.gmra.mxu1 %vm413_vm2, %v409_v43  ;;  %594 = vmatmul.msk.f32.vlgmr.msra.gmra.mxu2 %vm413_vm2, %v411_v44 }
  0xc3   : > { %593 = vmatmul.msk.f32.gmra.mxu1 %vm413_vm2, %v410_v45  ;;  %595 = vmatmul.msk.f32.gmra.mxu2 %vm413_vm2, %v412_v46 }
 0x138   : > { %v443_v47 = vpop.f32.mrf.mxu1 }
 0x139   : > { %v456_v48 = vsel %vm455_vm3, %v443_v47, -inf }
 0x13a   : > { %457 = vmax.xlane.f32.xlu2 %v456_v48 }
 0x13e   : > { %v449_v49 = vpop.f32.mrf.mxu2 }
 0x13f   : > { %v462_v50 = vsel %vm455_vm3, %v449_v49, -inf }
 0x140   : > { %463 = vmax.xlane.f32.xlu1 %v462_v50  ;;  %v446_v51 = vpop.f32.mrf.mxu1 }
 0x141   : > { %v459_v52 = vsel %vm455_vm3, %v446_v51, -inf }
 0x142   : > { %460 = vmax.xlane.f32.xlu0 %v459_v52 }
 0x146   : > { %v452_v53 = vpop.f32.mrf.mxu2 }
 0x147   : > { %v465_v54 = vsel %vm455_vm3, %v452_v53, -inf }
 0x148   : > { %466 = vmax.xlane.f32.xlu2 %v465_v54 }
 0x1ad   : > { %v458_v58 = vpop.xlane.xlu2 %457 }
 0x1ae   : > { %v474_v62 = vperm.slane %v458_v58, %v473_v56 }
 0x1b3   : > { %v464_v63 = vpop.xlane.xlu1 %463 }
 0x1b4   : > { %v480_v2 = vperm.slane %v464_v63, %v479_v61 }
 0x1b5   : > { %v461_v59 = vpop.xlane.xlu0 %460 }
 0x1b6   : > { %v476_v60 = vperm.slane %v461_v59, %v475_v57 }
 0x1b8   : > { %v478_v1 = vsel %vm477_vm4, %v476_v60, %v474_v62 }
 0x1b9   : > { %v482_v5 = vsel %vm481_vm5, %v480_v2, %v478_v1 }
 0x1bb   : > { %v467_v3 = vpop.xlane.xlu2 %466 }
 0x1bc   : > { %v484_v4 = vperm.slane %v467_v3, %v483_v0 }
 0x1be   : > { %v486_v6 = vsel %vm485_vm6, %v484_v4, %v482_v5 }
 0x1bf   : > { %489 = vst.msk [vmem:[%s280_s19] sm:$0x1] %vm488_vm7, %v486_v6 }
 0x1c0   : > { %690 = shalt.err (!%p687_p5)
}
 0x1c1   : > { %603 = dma.vmem_to_hbm [thread:$0]  (%p819_p4), %s502_s20, 16, %s504_s15, %s491_s24  }
 0x1c2 PF: > { %p609_p6 = scmp.ge.s32.totalorder %s741_s26, 2  ;;  %s515_s13 = sand.u32 1, %s721_s21  }
 0x1c3   : > { %s516_s14 = scalar_lea.sflag [#allocation3], %s515_s13 }
 0x1c4   : > { %p606_p7 = pnand %p609_p6, %p826_p8 }
 0x1c6   : > { %p607_p9 = pneg %p606_p7 }
 0x1c8   : > { %716 = dma.done.wait (%p607_p9), %s516_s14, 16  }
 0x1c9   : > { %718 = vsyncadd (%p607_p9), %s516_s14, 4294967280  ;;  %s19_s26 = sadd.s32 1, %s741_s26   ;;  %s949_s21 = smov %s725_s22 }
 0x1ca   : > { %p16_p10 = scmp.ge.s32.totalorder %s19_s26, 4   ;;  %s950_s22 = smov %s729_s23 }
 0x1cb   : > { %s951_s23 = smov %s832_s10  ;;  %s952_s24 = smov %s737_s25 }
 0x1cc   : > { %s953_s25 = smov %s955_s29  ;;  %18 = sbr.rel (!%p16_p10) target bundleno = 4 (0x4), region = 82 }
 0x1d1   :  { %521 = vsyncpa [#allocation3], 1 }
 0x1d2   :  { %523 = vsyncpa [#allocation3 + $0x1], 1 }

</bundles_post_ra>
